<compile_context>
chip_gen: v7x
topology: tpu7x:2x2x1
jax: 0.10.0
libtpu: 0.0.40
codegen_flags: <defaults>
</compile_context>

<pallas_src>
import jax
import jax.numpy as jnp
from jax import lax
from jax.experimental import pallas as pl
from jax.experimental.pallas import tpu as pltpu


def _round_up(x, m):
    return (x + m - 1) // m * m


def _mlp_kernel(x_ref, w0_ref, b0_ref, w1_ref, b1_ref, w2_ref, b2_ref, o_ref):
    # x_ref: (TN, F) in its natural layout.  Layer 0 contracts over F on *both*
    # operands, so the transpose is absorbed by the MXU and the activations
    # come out as (H, TN) with candidates on the lane axis.
    x = x_ref[...]

    # layer 0: (H0, F) x (TN, F)^T -> (H0, TN), ReLU   (MXU, f32 accumulation)
    h = lax.dot_general(
        w0_ref[...], x,
        dimension_numbers=(((1,), (1,)), ((), ())),
        preferred_element_type=jnp.float32,
    )
    h = jnp.maximum(h + b0_ref[...], 0.0)

    # layer 1: (H1, H0) @ (H0, TN) -> (H1, TN), ReLU   (MXU)
    h = jnp.dot(w1_ref[...], h, preferred_element_type=jnp.float32)
    h = jnp.maximum(h + b1_ref[...], 0.0)

    # final layer H1 -> 1 off the MXU: VPU broadcast-multiply + sublane (XLU)
    # reduce, scalar bias from SMEM.  (1, TN): lane-dense store.
    o_ref[...] = jnp.sum(h * w2_ref[...], axis=0, keepdims=True) + b2_ref[0]


def model_cosine_forward(entity_features, params, features_mask=None, *, tile_n=16384):
    """entity_features: (1, N, F) f32; features_mask: (F,) f32 or None.

    params are in PyTorch nn.Linear layout: (W0 (H0,F), b0 (H0,), W1 (H1,H0),
    b1 (H1,), W2 (1,H1), b2 (1,)).  Returns (1, N) f32 logit scores.
    """
    assert entity_features.ndim == 3 and entity_features.shape[0] == 1
    _, n, f = entity_features.shape
    w0, b0, w1, b1, w2, b2 = params
    h0 = w0.shape[0]
    h1 = w1.shape[0]
    assert w0.shape == (h0, f) and w1.shape == (h1, h0) and w2.shape == (1, h1)

    # Fold the feature mask into W0:  (x * m) @ W0^T == x @ (W0 * m)^T  (exact).
    if features_mask is not None:
        w0 = w0 * features_mask.reshape(1, f).astype(w0.dtype)

    # Natural layout, no pad: just drop the leading batch-1 axis (free reshape).
    x = entity_features.reshape(n, f)

    # --- tile selection ---------------------------------------------------
    tn = max(128, (int(tile_n) // 128) * 128)        # multiple of 128
    tn = min(tn, _round_up(n, 128))                  # never bigger than needed
    if n > 128:
        tn = min(tn, _round_up(pl.cdiv(n, 2), 128))  # >=2 grid steps (v7x megacore)
    if tn > n:
        tn = n                                       # tiny N: one full-extent block
    grid_n = pl.cdiv(n, tn)

    # VMEM budget: double-buffered x tile (F lane-pads to 128), double-buffered
    # (1, TN) output (sublane-pads to 8), + headroom for weights & scratch.
    vmem_need = 2 * tn * 128 * 4 + 2 * 8 * tn * 4 + (4 << 20)
    vmem_limit = int(min(max(vmem_need, 16 << 20), 64 << 20))

    flops = 2 * n * (f * h0 + h0 * h1 + h1)
    bytes_accessed = 4 * (n * f + n + w0.size + b0.size + w1.size + b1.size + w2.size + b2.size)
    cost = pl.CostEstimate(flops=int(flops), transcendentals=0,
                           bytes_accessed=int(bytes_accessed))

    b0_col = b0.reshape(h0, 1)
    b1_col = b1.reshape(h1, 1)
    w2_col = w2.reshape(h1, 1)
    b2_s = b2.reshape(1)

    const2 = lambda i: (0, 0)  # resident weight/bias blocks

    out = pl.pallas_call(
        _mlp_kernel,
        out_shape=jax.ShapeDtypeStruct((1, n), jnp.float32),
        grid_spec=pltpu.PrefetchScalarGridSpec(
            num_scalar_prefetch=0,
            grid=(grid_n,),
            in_specs=[
                pl.BlockSpec((tn, f), lambda i: (i, 0)),            # x tile (pipelined)
                pl.BlockSpec((h0, f), const2),                      # W0 (mask folded), resident
                pl.BlockSpec((h0, 1), const2),                      # b0 column
                pl.BlockSpec((h1, h0), const2),                     # W1
                pl.BlockSpec((h1, 1), const2),                      # b1 column
                pl.BlockSpec((h1, 1), const2),                      # W2 as a column
                pl.BlockSpec(memory_space=pltpu.MemorySpace.SMEM),  # b2 scalar
            ],
            out_specs=pl.BlockSpec((1, tn), lambda i: (0, i)),
        ),
        compiler_params=pltpu.CompilerParams(
            dimension_semantics=("parallel",),
            vmem_limit_bytes=vmem_limit,
        ),
        cost_estimate=cost,
    )(x, w0, b0_col, w1, b1_col, w2_col, b2_s)

    return out  # (1, N)


def init_params(key, num_features=10, num_hidden=(20, 10)):
    """Deterministic synthetic parameters in PyTorch nn.Linear layout (out, in)."""
    sizes = [num_features, *num_hidden, 1]
    params = []
    for i in range(len(sizes) - 1):
        key, kw, kb = jax.random.split(key, 3)
        fan_in, fan_out = sizes[i], sizes[i + 1]
        bound = 1.0 / jnp.sqrt(fan_in)
        w = jax.random.uniform(kw, (fan_out, fan_in), jnp.float32, -bound, bound)
        b = jax.random.uniform(kb, (fan_out,), jnp.float32, -bound, bound)
        params += [w, b]
    return tuple(params)


def _ref_forward(x3, ps, mask):
    """Pure-JAX reference (PyTorch layout: y = x @ W.T + b)."""
    w0, b0, w1, b1, w2, b2 = ps
    x = x3 if mask is None else x3 * mask
    h = jnp.maximum(x @ w0.T + b0, 0.0)
    h = jnp.maximum(h @ w1.T + b1, 0.0)
    return jnp.squeeze(h @ w2.T + b2, axis=-1)


if __name__ == "__main__":
    key = jax.random.PRNGKey(0)
    k_x, k_m, k_p, k_x2 = jax.random.split(key, 4)

    num_features = 10
    num_hidden = (20, 10)
    num_candidates = 8

    entity_features = jax.random.normal(
        k_x, (1, num_candidates, num_features), jnp.float32)
    features_mask = (jax.random.uniform(k_m, (num_features,)) > 0.3).astype(jnp.float32)
    params = init_params(k_p, num_features, num_hidden)

    # masked path
    scores = model_cosine_forward(entity_features, params, features_mask)
    jax.block_until_ready(scores)
    ref = _ref_forward(entity_features, params, features_mask)
    assert scores.shape == (1, num_candidates), scores.shape
    assert jnp.allclose(scores, ref, atol=1e-5, rtol=1e-5), \
        float(jnp.max(jnp.abs(scores - ref)))

    # no-mask path
    scores_nm = model_cosine_forward(entity_features, params, None)
    ref_nm = _ref_forward(entity_features, params, None)
    assert jnp.allclose(scores_nm, ref_nm, atol=1e-5, rtol=1e-5)

    # multi-tile + ragged-tail path (grid > 1, partial last block)
    n2 = 300
    x2 = jax.random.normal(k_x2, (1, n2, num_features), jnp.float32)
    scores2 = model_cosine_forward(x2, params, features_mask)
    jax.block_until_ready(scores2)
    ref2 = _ref_forward(x2, params, features_mask)
    assert scores2.shape == (1, n2), scores2.shape
    assert jnp.allclose(scores2, ref2, atol=1e-4, rtol=1e-4), \
        float(jnp.max(jnp.abs(scores2 - ref2)))

    print("KERNEL_OK")
</pallas_src>

<mosaic_0001>
module attributes {stable_mosaic.version = 11 : i64} {
  func.func @_mlp_kernel(%arg0: i32, %arg1: memref<8x10xf32, #tpu.memory_space<vmem>>, %arg2: memref<20x10xf32, #tpu.memory_space<vmem>>, %arg3: memref<20x1xf32, #tpu.memory_space<vmem>>, %arg4: memref<10x20xf32, #tpu.memory_space<vmem>>, %arg5: memref<10x1xf32, #tpu.memory_space<vmem>>, %arg6: memref<10x1xf32, #tpu.memory_space<vmem>>, %arg7: memref<1xf32, #tpu.memory_space<smem>>, %arg8: memref<1x8xf32, #tpu.memory_space<vmem>>) attributes {dimension_semantics = [#tpu.dimension_semantics<parallel>], iteration_bounds = array<i64: 1>, scalar_prefetch = 0 : i64, scratch_operands = 0 : i64, tpu.core_type = #tpu.core_type<tc>, window_params = [{transform_indices = @transform_0, window_bounds = array<i64: 8, 10>}, {pipeline_mode = #tpu.pipeline_mode<synchronous>, transform_indices = @transform_1, window_bounds = array<i64: 20, 10>}, {pipeline_mode = #tpu.pipeline_mode<synchronous>, transform_indices = @transform_2, window_bounds = array<i64: 20, 1>}, {pipeline_mode = #tpu.pipeline_mode<synchronous>, transform_indices = @transform_3, window_bounds = array<i64: 10, 20>}, {pipeline_mode = #tpu.pipeline_mode<synchronous>, transform_indices = @transform_4, window_bounds = array<i64: 10, 1>}, {pipeline_mode = #tpu.pipeline_mode<synchronous>, transform_indices = @transform_5, window_bounds = array<i64: 10, 1>}, {transform_indices = @transform_6, window_bounds = array<i64: 1>}, {transform_indices = @transform_7, window_bounds = array<i64: 1, 8>}]} {
    %c0 = arith.constant 0 : index
    %c0_0 = arith.constant 0 : index
    %0 = vector.load %arg1[%c0, %c0_0] : memref<8x10xf32, #tpu.memory_space<vmem>>, vector<8x10xf32>
    %c0_1 = arith.constant 0 : index
    %c0_2 = arith.constant 0 : index
    %1 = vector.load %arg2[%c0_1, %c0_2] : memref<20x10xf32, #tpu.memory_space<vmem>>, vector<20x10xf32>
    %cst = arith.constant dense<0.000000e+00> : vector<20x8xf32>
    %2 = tpu.matmul %1, %0, %cst {dimension_numbers = #tpu.dot_dimension_numbers<[1], [1], [0], [0], [0, 0, 1, 0], [], []>} : vector<20x10xf32>, vector<8x10xf32>, vector<20x8xf32> -> vector<20x8xf32>
    %c0_3 = arith.constant 0 : index
    %c0_4 = arith.constant 0 : index
    %3 = vector.load %arg3[%c0_3, %c0_4] : memref<20x1xf32, #tpu.memory_space<vmem>>, vector<20x1xf32>
    %4 = vector.broadcast %3 : vector<20x1xf32> to vector<20x8xf32>
    %5 = arith.addf %2, %4 : vector<20x8xf32>
    %cst_5 = arith.constant 0.000000e+00 : f32
    %6 = vector.broadcast %cst_5 : f32 to vector<20x8xf32>
    %7 = arith.maximumf %5, %6 : vector<20x8xf32>
    %c0_6 = arith.constant 0 : index
    %c0_7 = arith.constant 0 : index
    %8 = vector.load %arg4[%c0_6, %c0_7] : memref<10x20xf32, #tpu.memory_space<vmem>>, vector<10x20xf32>
    %cst_8 = arith.constant dense<0.000000e+00> : vector<10x8xf32>
    %9 = tpu.matmul %8, %7, %cst_8 {dimension_numbers = #tpu.dot_dimension_numbers<[1], [0], [0], [1], [0, 0, 1, 1], [], []>} : vector<10x20xf32>, vector<20x8xf32>, vector<10x8xf32> -> vector<10x8xf32>
    %c0_9 = arith.constant 0 : index
    %c0_10 = arith.constant 0 : index
    %10 = vector.load %arg5[%c0_9, %c0_10] : memref<10x1xf32, #tpu.memory_space<vmem>>, vector<10x1xf32>
    %11 = vector.broadcast %10 : vector<10x1xf32> to vector<10x8xf32>
    %12 = arith.addf %9, %11 : vector<10x8xf32>
    %cst_11 = arith.constant 0.000000e+00 : f32
    %13 = vector.broadcast %cst_11 : f32 to vector<10x8xf32>
    %14 = arith.maximumf %12, %13 : vector<10x8xf32>
    %c0_12 = arith.constant 0 : index
    %c0_13 = arith.constant 0 : index
    %15 = vector.load %arg6[%c0_12, %c0_13] : memref<10x1xf32, #tpu.memory_space<vmem>>, vector<10x1xf32>
    %16 = vector.broadcast %15 : vector<10x1xf32> to vector<10x8xf32>
    %17 = arith.mulf %14, %16 : vector<10x8xf32>
    %cst_14 = arith.constant dense<0.000000e+00> : vector<8xf32>
    %18 = vector.multi_reduction <add>, %17, %cst_14 [0] : vector<10x8xf32> to vector<8xf32>
    %19 = vector.shape_cast %18 : vector<8xf32> to vector<1x8xf32>
    %c0_15 = arith.constant 0 : index
    %20 = memref.load %arg7[%c0_15] : memref<1xf32, #tpu.memory_space<smem>>
    %21 = vector.broadcast %20 : f32 to vector<1x8xf32>
    %22 = arith.addf %19, %21 : vector<1x8xf32>
    %c0_16 = arith.constant 0 : index
    %c0_17 = arith.constant 0 : index
    %23 = vector.load %arg8[%c0_16, %c0_17] : memref<1x8xf32, #tpu.memory_space<vmem>>, vector<1x8xf32>
    tpu.vector_store %arg8[%c0_16, %c0_17], %22 {strides = array<i32>} : memref<1x8xf32, #tpu.memory_space<vmem>>, vector<1x8xf32>,
    return
  }
  func.func @transform_0(%arg0: i32) -> (i32, i32) {
    %c0_i32 = arith.constant 0 : i32
    %c0_i32_0 = arith.constant 0 : i32
    return %arg0, %c0_i32 : i32, i32
  }
  func.func @transform_1(%arg0: i32) -> (i32, i32) {
    %c0_i32 = arith.constant 0 : i32
    %c0_i32_0 = arith.constant 0 : i32
    %c0_i32_1 = arith.constant 0 : i32
    return %c0_i32, %c0_i32_0 : i32, i32
  }
  func.func @transform_2(%arg0: i32) -> (i32, i32) {
    %c0_i32 = arith.constant 0 : i32
    %c0_i32_0 = arith.constant 0 : i32
    %c0_i32_1 = arith.constant 0 : i32
    return %c0_i32, %c0_i32_0 : i32, i32
  }
  func.func @transform_3(%arg0: i32) -> (i32, i32) {
    %c0_i32 = arith.constant 0 : i32
    %c0_i32_0 = arith.constant 0 : i32
    %c0_i32_1 = arith.constant 0 : i32
    return %c0_i32, %c0_i32_0 : i32, i32
  }
  func.func @transform_4(%arg0: i32) -> (i32, i32) {
    %c0_i32 = arith.constant 0 : i32
    %c0_i32_0 = arith.constant 0 : i32
    %c0_i32_1 = arith.constant 0 : i32
    return %c0_i32, %c0_i32_0 : i32, i32
  }
  func.func @transform_5(%arg0: i32) -> (i32, i32) {
    %c0_i32 = arith.constant 0 : i32
    %c0_i32_0 = arith.constant 0 : i32
    %c0_i32_1 = arith.constant 0 : i32
    return %c0_i32, %c0_i32_0 : i32, i32
  }
  func.func @transform_6(%arg0: i32) -> i32 {
    %c0_i32 = arith.constant 0 : i32
    %c0_i32_0 = arith.constant 0 : i32
    return %c0_i32 : i32
  }
  func.func @transform_7(%arg0: i32) -> (i32, i32) {
    %c0_i32 = arith.constant 0 : i32
    %c0_i32_0 = arith.constant 0 : i32
    return %c0_i32, %arg0 : i32, i32
  }
}

</mosaic_0001>

<bundles_post_ra>
// kernel: tpu_custom_call.1
= control target key start
LH: loop header
LB: loop body
LE: loop exit
PB: predicated region body
PF: predicated region fallthrough
CT: control target
= control target key end

     0   :  { %vm50_vm0 = vcmask 80896   ;;  %v362_v1 = vmov 0.0   ;;  %vm363_vm1 = vmmov 0   ;;  %v364_v4 = vmov 0   ;;  %s469_s0 = inlined_call_operand.vmem [shape: f32[8,10], index: 0, kind: input, shape index: {}]   ;;  %s470_s1 = inlined_call_operand.vmem [shape: f32[20,10], index: 1, kind: input, shape index: {}]   ;;  %s471_s2 = inlined_call_operand.vmem [shape: f32[20,1], index: 2, kind: input, shape index: {}]   ;;  %s472_s3 = inlined_call_operand.vmem [shape: f32[10,20], index: 3, kind: input, shape index: {}]   ;;  %s473_s4 = inlined_call_operand.vmem [shape: f32[10,1], index: 4, kind: input, shape index: {}]   ;;  %s474_s5 = inlined_call_operand.vmem [shape: f32[10,1], index: 5, kind: input, shape index: {}]   ;;  %s475_s6 = inlined_call_operand.<no memory space> [shape: f32[1], index: 6, kind: input, shape index: {}]   ;;  %s476_s7 = inlined_call_operand.hbm [shape: f32[1,8], index: 7, kind: output, shape index: {}]  }
   0x1   :  { %v28_v0 = vld [vmem:[%s469_s0] sm:$0xff]  ;;  %308 = vmatprep.subr.mxu0 %v362_v1  ;;  %310 = vmatprep.mubr.msk.f32.mxu0 %vm363_vm1, %v362_v1  ;;  %v34_v5 = vld [vmem:[%s471_s2 + $0x10] sm:$0xf] }
   0x2   :  { %v32_v2 = vld [vmem:[%s471_s2] sm:$0xff]  ;;  %309 = vmatpush3.xpose.msk.msra.mxu0 %vm50_vm0, %v28_v0  ;;  %336 = vset.pattern.permute.xlu0 %v364_v4 }
   0x3   :  { %v29_v3 = vld [vmem:[%s470_s1] sm:$0xff]  ;;  %37 = vperm.xlu0 %336, %v32_v2   ;;  %337 = vset.pattern.permute.xlu1 %v364_v4 }
   0x4   :  { %13 = vsyncpa [#allocation4], 0  ;;  %v33_v6 = vld [vmem:[%s471_s2 + $0x8] sm:$0xff]  ;;  %47 = vperm.xlu1 %337, %v34_v5   ;;  %v148_v7 = vld [vmem:[%s473_s4] sm:$0xff]  ;;  %vm160_vm2 = vcmask 162816   ;;  %vm167_vm3 = vcmask 1043456   ;;  %v274_v51 = vstv %s475_s6 }
   0x5   :  { %311 = vmatmul.mubr.msk.f32.vlgmr.msra.gmra.mrb[0].mxu0 %vm50_vm0, %v29_v3  ;;  %v30_v8 = vld [vmem:[%s470_s1 + $0x8] sm:$0xff]  ;;  %v248_v10 = vld [vmem:[%s474_s5] sm:$0xff]  ;;  %v31_v11 = vld [vmem:[%s470_s1 + $0x10] sm:$0xf]  ;;  %vm264_vm4 = vcmask 58368   ;;  %vm262_vm5 = vcmask 64512  }
   0x6   :  { %313 = vmatprep.mubr.msk.f32.mxu0 %vm363_vm1, %v362_v1  ;;  %v149_v9 = vld [vmem:[%s473_s4 + $0x8] sm:$0x3]  ;;  %v146_v13 = vld [vmem:[%s472_s3] sm:$0xff]  ;;  %s365_s23 = smov [#allocation3]   ;;  %vm276_vm6 = vcmask 57344  }
   0x7   :  { %42 = vperm.xlu0 %336, %v33_v6   ;;  %v249_v12 = vld [vmem:[%s474_s5 + $0x8] sm:$0x3]  ;;  %325 = vmatprep.mubr.msk.f32.mxu1 %vm160_vm2, %v146_v13  ;;  %s284_s24 = sshll.u32 %s365_s23, 4  ;;  %s285_s24 = int_to_ptr.vmem [resolvable:$true] %s284_s24 }
   0x8   :  { %152 = vperm.xlu1 %337, %v148_v7   ;;  %v147_v30 = vld [vmem:[%s472_s3 + $0x8] sm:$0x3]  ;;  %s338_s25 = scalar_lea.vmem %s285_s24, 16  ;;  %s342_s26 = scalar_lea.vmem %s285_s24, 32 }
   0x9   :  { %314 = vmatmul.mubr.msk.f32.gmra.mrb[2].mxu0 %vm50_vm0, %v30_v8  ;;  %p339_p0 = scmp.ne.s32.totalorder %s285_s24, %s338_s25  ;;  %p343_p1 = scmp.lt.s32.totalorder %s285_s24, %s285_s24 }
   0xa   :  { %316 = vmatprep.mubr.msk.f32.mxu0 %vm363_vm1, %v362_v1  ;;  %p344_p2 = scmp.lt.s32.totalorder %s342_s26, %s338_s25 }
   0xb   :  { %157 = vperm.xlu0 %336, %v149_v9  }
   0xc   :  { %252 = vperm.xlu1 %337, %v248_v10   ;;  %p345_p3 = por %p344_p2, %p343_p1 }
   0xd   :  { %317 = vmatmul.mubr.msk.f32.gmra.mrb[4].mxu0 %vm50_vm0, %v31_v11 }
   0xe   :  { %p346_p4 = pnand %p345_p3, %p339_p0 }
   0xf   :  { %257 = vperm.xlu0 %336, %v249_v12  }
  0x82   :  { %v38_v14 = vpop.permute.xlu0 %37 }
  0x83   :  { %v48_v24 = vpop.permute.xlu1 %47 }
  0x86   :  { %v43_v18 = vpop.permute.xlu0 %42 }
  0x87   :  { %v153_v32 = vpop.permute.xlu1 %152 }
  0x8a   :  { %v158_v31 = vpop.permute.xlu0 %157 }
  0x8b   :  { %v253_v40 = vpop.permute.xlu1 %252 }
  0x8e   :  { %v258_v38 = vpop.permute.xlu0 %257 }
  0xd8   :  { %v129_v15 = vpop.f32.mrb[0].mxu0 }
  0xd9   :  { %v312_v16 = vpop.f32.mrb[1].mxu0  ;;  %v130_v17 = vadd.f32 %v129_v15, %v38_v14 }
  0xdb   :  { %v143_v22 = vmax.f32 %v130_v17, 0.0 }
  0xdc   :  { %v134_v19 = vpop.f32.mrb[2].mxu0 }
  0xdd   :  { %v135_v20 = vadd.f32 %v134_v19, %v43_v18  ;;  %v315_v21 = vpop.f32.mrb[3].mxu0 }
  0xdf   :  { %v144_v23 = vmax.f32 %v135_v20, 0.0 }
  0xe0   :  { %v139_v25 = vpop.f32.mrb[4].mxu0 }
  0xe1   :  { %v140_v26 = vadd.f32 %v139_v25, %v48_v24  ;;  %v318_v27 = vpop.f32.mrb[5].mxu0  ;;  %v328_v28 = vpack.c.bf16 %v144_v23, %v143_v22 }
  0xe3   :  { %v145_v29 = vmax.f32 %v140_v26, 0.0  ;;  %329 = vmatprep.subr.bf16.mxu1 %v328_v28 }
  0xe4   :  { %331 = vmatpush3.bf16.msra.mxu1 %v328_v28 }
  0xe5   :  { %323 = vmatprep.subr.msk.mxu1 %vm167_vm3, %v145_v29 }
  0xe8   :  { %324 = vmatpush3.msk.msra.mxu1 %vm167_vm3, %v145_v29 }
  0xe9   :  { %326 = vmatmul.mubr.msk.f32.vlgmr.msra.gmra.mrb[0].mxu1 %vm160_vm2, %v147_v30 }
 0x1bc   :  { %v327_v33 = vpop.f32.mrb[0].mxu1 }
 0x1bd   :  { %v243_v34 = vadd.f32 %v327_v33, %v158_v31  ;;  %v237_v35 = vpop.f32.mrb[1].mxu1 }
 0x1be   :  { %v238_v36 = vadd.f32 %v237_v35, %v153_v32 }
 0x1bf   :  { %v247_v37 = vmax.f32 %v243_v34, 0.0 }
 0x1c0   :  { %v246_v39 = vmax.f32 %v238_v36, 0.0 }
 0x1c1   :  { %v261_v41 = vmul.f32 %v258_v38, %v247_v37 }
 0x1c2   :  { %v260_v42 = vmul.f32 %v253_v40, %v246_v39 }
 0x1c3   :  { %v265_v43 = vsel %vm264_vm4, %v261_v41, 0.0 }
 0x1c4   :  { %v263_v44 = vsel %vm262_vm5, %v260_v42, 0.0 }
 0x1c5   :  { %v266_v45 = vadd.f32 %v265_v43, %v263_v44 }
 0x1c7   :  { %v267_v46 = vrot.slane %v266_v45, 4 }
 0x1c9   :  { %v268_v47 = vadd.f32 %v267_v46, %v266_v45 }
 0x1cb   :  { %v269_v48 = vrot.slane %v268_v47, 2 }
 0x1cd   :  { %v270_v49 = vadd.f32 %v269_v48, %v268_v47 }
 0x1cf   :  { %v271_v50 = vrot.slane %v270_v49, 1 }
 0x1d1   :  { %v272_v52 = vadd.f32 %v271_v50, %v270_v49 }
 0x1d3   :  { %v275_v53 = vadd.f32 %v274_v51, %v272_v52 }
 0x1d5   :  { %277 = vst.msk [vmem:[#allocation3] sm:$0x1] %vm276_vm6, %v275_v53 }
 0x1d6   :  { %349 = shalt.err (!%p346_p4)
}
 0x1d7   :  { %s350_s29 = scalar_lea.hbm %s476_s7, 16 }
 0x1d8   :  { %p351_p5 = scmp.ne.s32.totalorder %s476_s7, %s350_s29  ;;  %p354_p6 = scmp.lt.u32.totalorder %s350_s29, %s476_s7 }
 0x1da   :  { %p356_p7 = pnand %p354_p6, %p351_p5 }
 0x1dc   :  { %359 = shalt.err (!%p356_p7)
}
 0x1dd   :  { %287 = dma.vmem_to_hbm [thread:$0]  %s285_s24, 16, %s476_s7, [#allocation4]  }
 0x1de   :  { %360 = dma.done.wait [#allocation4], 16  }
 0x1df   :  { %361 = vsyncadd [#allocation4], 4294967280 }
 0x1e0   :  { %291 = vsyncpa [#allocation4], 1 }

</bundles_post_ra>
